<compile_context>
chip_gen: v7x
topology: tpu7x:2x2x1
jax: 0.10.0
libtpu: 0.0.40
codegen_flags: <defaults>
</compile_context>

<pallas_src>
import jax
import jax.numpy as jnp
from jax.experimental import pallas as pl
from jax.experimental.pallas import tpu as pltpu

BN_EPS = 1e-5
F_IN, F_HID, F_OUT = 29, 20, 2


def _round_up(v, m):
    return ((v + m - 1) // m) * m


# ---------------------------------------------------------------------------
# Kernel: (packed) f32 x -> bf16 cast -> matmul/ReLU x2 -> matmul -> f32 out
# ---------------------------------------------------------------------------
def ccmodel_kernel(x_ref, w1_ref, b1_ref, w2_ref, b2_ref, w3_ref, b3_ref, o_ref):
    x = x_ref[...].astype(jnp.bfloat16)            # in-kernel cast (no host astype pass)

    # layer1 + ReLU (dropout1 = identity in eval)
    h = jnp.dot(x, w1_ref[...], preferred_element_type=jnp.float32) + b1_ref[...]
    h = jnp.maximum(h, 0.0).astype(jnp.bfloat16)   # bat1 folded into w2/b2

    # layer2 + ReLU (dropout2 = identity in eval)
    h = jnp.dot(h, w2_ref[...], preferred_element_type=jnp.float32) + b2_ref[...]
    h = jnp.maximum(h, 0.0).astype(jnp.bfloat16)   # bat2 folded into w3/b3

    # output layer
    out = jnp.dot(h, w3_ref[...], preferred_element_type=jnp.float32) + b3_ref[...]
    o_ref[...] = out.astype(o_ref.dtype)


# ---------------------------------------------------------------------------
# Host-side parameter folding + block-diagonal packing (done once)
# ---------------------------------------------------------------------------
def _fold_bn_into_next_linear(w_next, b_next, gamma, beta, mean, var):
    scale = gamma * jax.lax.rsqrt(var + BN_EPS)          # [f]
    shift = beta - mean * scale                          # [f]
    return scale[:, None] * w_next, shift @ w_next + b_next


def default_pack_factor():
    """p=4 for 128-wide-MXU chips (<= v5), p=8 for 256-wide (v6e / v7x)."""
    try:
        kind = jax.devices()[0].device_kind.lower()
    except Exception:
        return 4
    if any(t in kind for t in ("v2", "v3", "v4", "v5")):
        return 4
    return 8


def fold_params(p, pack=8, compute_dtype=jnp.bfloat16):
    """Fold BN1 into layer2 and BN2 into output; expand to block-diag packing."""
    w2f, b2f = _fold_bn_into_next_linear(p["w2"], p["b2"], p["g1"], p["be1"], p["m1"], p["v1"])
    w3f, b3f = _fold_bn_into_next_linear(p["w3"], p["b3"], p["g2"], p["be2"], p["m2"], p["v2"])
    eye = jnp.eye(pack, dtype=jnp.float32)
    bd = lambda w: jnp.kron(eye, w)                      # block-diagonal [p*in, p*out]
    tl = lambda b: jnp.tile(b, pack)                     # [p*out]
    return dict(
        pack=pack,
        w1=bd(p["w1"]).astype(compute_dtype), b1=tl(p["b1"]).reshape(1, -1).astype(jnp.float32),
        w2=bd(w2f).astype(compute_dtype),     b2=tl(b2f).reshape(1, -1).astype(jnp.float32),
        w3=bd(w3f).astype(compute_dtype),     b3=tl(b3f).reshape(1, -1).astype(jnp.float32),
    )


# ---------------------------------------------------------------------------
# VMEM sizing
# ---------------------------------------------------------------------------
def _vmem_estimate_bytes(tile_m, folded):
    lane = lambda c: _round_up(c, 128)
    f_in_p = folded["w1"].shape[0]
    f_hid_p = folded["w1"].shape[1]
    f_out_p = folded["w3"].shape[1]
    per_row = 4 * 2 * lane(f_in_p)                       # f32 x block, double-buffered
    per_row += 4 * 2 * lane(f_out_p)                     # f32 out block, double-buffered
    per_row += 4 * 2 * lane(f_hid_p)                     # f32 h1/h2 temporaries
    per_row += 2 * (lane(f_in_p) + lane(f_hid_p))        # bf16 casted copies
    weights = 2 * (lane(f_hid_p) * _round_up(f_in_p, 16)
                   + lane(f_hid_p) * _round_up(f_hid_p, 16)
                   + lane(f_out_p) * _round_up(f_hid_p, 16))
    biases = 4 * 8 * (2 * lane(f_hid_p) + lane(f_out_p))
    return tile_m * per_row + weights + biases + (2 << 20)


# ---------------------------------------------------------------------------
# Wrapper
# ---------------------------------------------------------------------------
def ccmodel_forward(x, folded, *, tile_m=2048, vmem_budget_bytes=48 << 20):
    """x: [N, 29] float32 (native dtype; cast to bf16 inside the kernel)."""
    n = x.shape[0]
    pack = folded["pack"]
    f_in_p = folded["w1"].shape[0]
    f_out_p = folded["w3"].shape[1]
    assert x.shape[1] * pack == f_in_p, (x.shape, f_in_p, pack)

    # Pack `pack` logical rows per MXU row; pad at most pack-1 rows first.
    m = -(-n // pack)
    if m * pack != n:
        x = jnp.pad(x, ((0, m * pack - n), (0, 0)))
    xp = x.reshape(m, f_in_p)                            # contiguous reshape (no copy)

    # Batch tile in packed rows: big enough to amortize per-step overhead,
    # small enough for the VMEM budget (v7x: 64 MiB physical), and >= 2 grid
    # steps when there is enough work so both v7x TensorCores are used.
    tile_m = max(8, min(_round_up(tile_m, 8), _round_up(m, 8)))
    while tile_m > 8 and _vmem_estimate_bytes(tile_m, folded) > vmem_budget_bytes:
        tile_m = _round_up(tile_m // 2, 8)
    if pl.cdiv(m, tile_m) < 2 and m >= 512:
        tile_m = _round_up(pl.cdiv(m, 2), 8)
    grid_m = pl.cdiv(m, tile_m)                          # remainder block masked by Pallas

    vmem_limit = int(min(64 << 20, max(32 << 20, 2 * _vmem_estimate_bytes(tile_m, folded))))
    param_bytes = sum(int(v.size) * v.dtype.itemsize for k, v in folded.items() if k != "pack")
    cost = pl.CostEstimate(
        flops=2 * n * (F_IN * F_HID + F_HID * F_HID + F_HID * F_OUT),
        transcendentals=0,
        bytes_accessed=n * (F_IN + F_OUT) * 4 + param_bytes,
    )

    const = lambda i: (0, 0)   # params resident in VMEM across all grid steps
    out = pl.pallas_call(
        ccmodel_kernel,
        out_shape=jax.ShapeDtypeStruct((m, f_out_p), jnp.float32),
        grid=(grid_m,),
        in_specs=[
            pl.BlockSpec((tile_m, f_in_p), lambda i: (i, 0)),
            pl.BlockSpec(folded["w1"].shape, const),
            pl.BlockSpec(folded["b1"].shape, const),
            pl.BlockSpec(folded["w2"].shape, const),
            pl.BlockSpec(folded["b2"].shape, const),
            pl.BlockSpec(folded["w3"].shape, const),
            pl.BlockSpec(folded["b3"].shape, const),
        ],
        out_specs=pl.BlockSpec((tile_m, f_out_p), lambda i: (i, 0)),
        compiler_params=pltpu.CompilerParams(
            dimension_semantics=("parallel",),
            vmem_limit_bytes=vmem_limit,
        ),
        cost_estimate=cost,
    )(xp, folded["w1"], folded["b1"], folded["w2"], folded["b2"],
      folded["w3"], folded["b3"])

    # Unpack [M, p*2] -> [M*p, 2] and drop padded rows.
    return out.reshape(m * pack, F_OUT)[:n]


# ---------------------------------------------------------------------------
# Synthetic parameters & references
# ---------------------------------------------------------------------------
def init_params(key):
    """Deterministic synthetic parameters matching CCModel's shapes (all f32)."""
    ks = jax.random.split(key, 14)

    def linear(kw, kb, fan_in, fan_out):
        bound = 1.0 / jnp.sqrt(jnp.float32(fan_in))
        w = jax.random.uniform(kw, (fan_in, fan_out), jnp.float32, -bound, bound)
        b = jax.random.uniform(kb, (fan_out,), jnp.float32, -bound, bound)
        return w, b

    w1, b1 = linear(ks[0], ks[1], F_IN, F_HID)
    w2, b2 = linear(ks[2], ks[3], F_HID, F_HID)
    w3, b3 = linear(ks[4], ks[5], F_HID, F_OUT)

    def bn(kg, kb, km, kv, f):
        g = 1.0 + 0.1 * jax.random.normal(kg, (f,), jnp.float32)
        be = 0.1 * jax.random.normal(kb, (f,), jnp.float32)
        mn = 0.1 * jax.random.normal(km, (f,), jnp.float32)
        v = jax.random.uniform(kv, (f,), jnp.float32, 0.5, 1.5)
        return g, be, mn, v

    g1, be1, m1, v1 = bn(ks[6], ks[7], ks[8], ks[9], F_HID)
    g2, be2, m2, v2 = bn(ks[10], ks[11], ks[12], ks[13], F_HID)

    return dict(w1=w1, b1=b1, g1=g1, be1=be1, m1=m1, v1=v1,
                w2=w2, b2=b2, g2=g2, be2=be2, m2=m2, v2=v2,
                w3=w3, b3=b3)


def reference_eval_f32(x, p):
    """Unfused, pure-f32 eval-mode forward (ground truth for the BN folding)."""
    h = jnp.maximum(x @ p["w1"] + p["b1"], 0.0)
    h = (h - p["m1"]) * (p["g1"] * jax.lax.rsqrt(p["v1"] + BN_EPS)) + p["be1"]
    h = jnp.maximum(h @ p["w2"] + p["b2"], 0.0)
    h = (h - p["m2"]) * (p["g2"] * jax.lax.rsqrt(p["v2"] + BN_EPS)) + p["be2"]
    return h @ p["w3"] + p["b3"]


def reference_folded(x, folded, compute_dtype=jnp.bfloat16):
    """Pure-JAX replica of the exact math the kernel performs (unpacked weights)."""
    h = jnp.dot(x.astype(compute_dtype), folded["w1"],
                preferred_element_type=jnp.float32) + folded["b1"]
    h = jnp.maximum(h, 0.0).astype(compute_dtype)
    h = jnp.dot(h, folded["w2"], preferred_element_type=jnp.float32) + folded["b2"]
    h = jnp.maximum(h, 0.0).astype(compute_dtype)
    return jnp.dot(h, folded["w3"], preferred_element_type=jnp.float32) + folded["b3"]


# ---------------------------------------------------------------------------
if __name__ == "__main__":
    key = jax.random.PRNGKey(0)
    k_x, k_p = jax.random.split(key)

    N = 300        # not a multiple of pack nor of the tile -> exercises padding/masking
    TILE_M = 16    # tiny packed-row tile for the test; production default is 2048

    x = jax.random.normal(k_x, (N, F_IN), jnp.float32)
    params = init_params(k_p)

    pack = default_pack_factor()
    folded = fold_params(params, pack=pack)

    out = ccmodel_forward(x, folded, tile_m=TILE_M)
    out = jax.block_until_ready(out)
    assert out.shape == (N, F_OUT), out.shape

    # Check 1: kernel matches a pure-JAX replica of its own (folded, bf16) math.
    folded_plain = fold_params(params, pack=1)
    ref_bf16 = reference_folded(x, folded_plain)
    assert jnp.allclose(out, ref_bf16, atol=1e-2, rtol=1e-2), "kernel vs folded-bf16 ref mismatch"

    # Check 2: BN folding preserves eval-mode semantics (pure f32, host-side).
    folded_f32 = fold_params(params, pack=1, compute_dtype=jnp.float32)
    ref_f32 = reference_eval_f32(x, params)
    ref_fold_f32 = reference_folded(x, folded_f32, compute_dtype=jnp.float32)
    assert jnp.allclose(ref_fold_f32, ref_f32, atol=1e-5, rtol=1e-5), "BN folding mismatch"

    # Check 3 (tolerance contract): bf16-compute kernel vs full-precision reference.
    assert jnp.allclose(out, ref_f32, atol=1e-1, rtol=1e-1), "kernel vs f32 reference mismatch"

    print("KERNEL_OK")
</pallas_src>

<mosaic_0001>
module attributes {stable_mosaic.version = 11 : i64} {
  func.func @ccmodel_kernel(%arg0: i32, %arg1: memref<16x232xf32, #tpu.memory_space<vmem>>, %arg2: memref<232x160xbf16, #tpu.memory_space<vmem>>, %arg3: memref<1x160xf32, #tpu.memory_space<vmem>>, %arg4: memref<160x160xbf16, #tpu.memory_space<vmem>>, %arg5: memref<1x160xf32, #tpu.memory_space<vmem>>, %arg6: memref<160x16xbf16, #tpu.memory_space<vmem>>, %arg7: memref<1x16xf32, #tpu.memory_space<vmem>>, %arg8: memref<16x16xf32, #tpu.memory_space<vmem>>) attributes {dimension_semantics = [#tpu.dimension_semantics<parallel>], iteration_bounds = array<i64: 3>, scalar_prefetch = 0 : i64, scratch_operands = 0 : i64, tpu.core_type = #tpu.core_type<tc>, window_params = [{transform_indices = @transform_0, window_bounds = array<i64: 16, 232>}, {pipeline_mode = #tpu.pipeline_mode<synchronous>, transform_indices = @transform_1, window_bounds = array<i64: 232, 160>}, {pipeline_mode = #tpu.pipeline_mode<synchronous>, transform_indices = @transform_2, window_bounds = array<i64: 1, 160>}, {pipeline_mode = #tpu.pipeline_mode<synchronous>, transform_indices = @transform_3, window_bounds = array<i64: 160, 160>}, {pipeline_mode = #tpu.pipeline_mode<synchronous>, transform_indices = @transform_4, window_bounds = array<i64: 1, 160>}, {pipeline_mode = #tpu.pipeline_mode<synchronous>, transform_indices = @transform_5, window_bounds = array<i64: 160, 16>}, {pipeline_mode = #tpu.pipeline_mode<synchronous>, transform_indices = @transform_6, window_bounds = array<i64: 1, 16>}, {transform_indices = @transform_7, window_bounds = array<i64: 16, 16>}]} {
    %c0 = arith.constant 0 : index
    %c0_0 = arith.constant 0 : index
    %0 = vector.load %arg1[%c0, %c0_0] : memref<16x232xf32, #tpu.memory_space<vmem>>, vector<16x232xf32>
    %1 = arith.truncf %0 : vector<16x232xf32> to vector<16x232xbf16>
    %c0_1 = arith.constant 0 : index
    %c0_2 = arith.constant 0 : index
    %2 = vector.load %arg2[%c0_1, %c0_2] : memref<232x160xbf16, #tpu.memory_space<vmem>>, vector<232x160xbf16>
    %cst = arith.constant dense<0.000000e+00> : vector<16x160xf32>
    %3 = tpu.matmul %1, %2, %cst {dimension_numbers = #tpu.dot_dimension_numbers<[1], [0], [0], [1], [0, 0, 1, 1], [], []>} : vector<16x232xbf16>, vector<232x160xbf16>, vector<16x160xf32> -> vector<16x160xf32>
    %c0_3 = arith.constant 0 : index
    %c0_4 = arith.constant 0 : index
    %4 = vector.load %arg3[%c0_3, %c0_4] : memref<1x160xf32, #tpu.memory_space<vmem>>, vector<1x160xf32>
    %5 = vector.broadcast %4 : vector<1x160xf32> to vector<16x160xf32>
    %6 = arith.addf %3, %5 : vector<16x160xf32>
    %cst_5 = arith.constant 0.000000e+00 : f32
    %7 = vector.broadcast %cst_5 : f32 to vector<16x160xf32>
    %8 = arith.maximumf %6, %7 : vector<16x160xf32>
    %9 = arith.truncf %8 : vector<16x160xf32> to vector<16x160xbf16>
    %c0_6 = arith.constant 0 : index
    %c0_7 = arith.constant 0 : index
    %10 = vector.load %arg4[%c0_6, %c0_7] : memref<160x160xbf16, #tpu.memory_space<vmem>>, vector<160x160xbf16>
    %cst_8 = arith.constant dense<0.000000e+00> : vector<16x160xf32>
    %11 = tpu.matmul %9, %10, %cst_8 {dimension_numbers = #tpu.dot_dimension_numbers<[1], [0], [0], [1], [0, 0, 1, 1], [], []>} : vector<16x160xbf16>, vector<160x160xbf16>, vector<16x160xf32> -> vector<16x160xf32>
    %c0_9 = arith.constant 0 : index
    %c0_10 = arith.constant 0 : index
    %12 = vector.load %arg5[%c0_9, %c0_10] : memref<1x160xf32, #tpu.memory_space<vmem>>, vector<1x160xf32>
    %13 = vector.broadcast %12 : vector<1x160xf32> to vector<16x160xf32>
    %14 = arith.addf %11, %13 : vector<16x160xf32>
    %cst_11 = arith.constant 0.000000e+00 : f32
    %15 = vector.broadcast %cst_11 : f32 to vector<16x160xf32>
    %16 = arith.maximumf %14, %15 : vector<16x160xf32>
    %17 = arith.truncf %16 : vector<16x160xf32> to vector<16x160xbf16>
    %c0_12 = arith.constant 0 : index
    %c0_13 = arith.constant 0 : index
    %18 = vector.load %arg6[%c0_12, %c0_13] : memref<160x16xbf16, #tpu.memory_space<vmem>>, vector<160x16xbf16>
    %cst_14 = arith.constant dense<0.000000e+00> : vector<16x16xf32>
    %19 = tpu.matmul %17, %18, %cst_14 {dimension_numbers = #tpu.dot_dimension_numbers<[1], [0], [0], [1], [0, 0, 1, 1], [], []>} : vector<16x160xbf16>, vector<160x16xbf16>, vector<16x16xf32> -> vector<16x16xf32>
    %c0_15 = arith.constant 0 : index
    %c0_16 = arith.constant 0 : index
    %20 = vector.load %arg7[%c0_15, %c0_16] : memref<1x16xf32, #tpu.memory_space<vmem>>, vector<1x16xf32>
    %21 = vector.broadcast %20 : vector<1x16xf32> to vector<16x16xf32>
    %22 = arith.addf %19, %21 : vector<16x16xf32>
    %c0_17 = arith.constant 0 : index
    %c0_18 = arith.constant 0 : index
    %23 = vector.load %arg8[%c0_17, %c0_18] : memref<16x16xf32, #tpu.memory_space<vmem>>, vector<16x16xf32>
    tpu.vector_store %arg8[%c0_17, %c0_18], %22 {strides = array<i32>} : memref<16x16xf32, #tpu.memory_space<vmem>>, vector<16x16xf32>,
    return
  }
  func.func @transform_0(%arg0: i32) -> (i32, i32) {
    %c0_i32 = arith.constant 0 : i32
    %c0_i32_0 = arith.constant 0 : i32
    return %arg0, %c0_i32 : i32, i32
  }
  func.func @transform_1(%arg0: i32) -> (i32, i32) {
    %c0_i32 = arith.constant 0 : i32
    %c0_i32_0 = arith.constant 0 : i32
    %c0_i32_1 = arith.constant 0 : i32
    return %c0_i32, %c0_i32_0 : i32, i32
  }
  func.func @transform_2(%arg0: i32) -> (i32, i32) {
    %c0_i32 = arith.constant 0 : i32
    %c0_i32_0 = arith.constant 0 : i32
    %c0_i32_1 = arith.constant 0 : i32
    return %c0_i32, %c0_i32_0 : i32, i32
  }
  func.func @transform_3(%arg0: i32) -> (i32, i32) {
    %c0_i32 = arith.constant 0 : i32
    %c0_i32_0 = arith.constant 0 : i32
    %c0_i32_1 = arith.constant 0 : i32
    return %c0_i32, %c0_i32_0 : i32, i32
  }
  func.func @transform_4(%arg0: i32) -> (i32, i32) {
    %c0_i32 = arith.constant 0 : i32
    %c0_i32_0 = arith.constant 0 : i32
    %c0_i32_1 = arith.constant 0 : i32
    return %c0_i32, %c0_i32_0 : i32, i32
  }
  func.func @transform_5(%arg0: i32) -> (i32, i32) {
    %c0_i32 = arith.constant 0 : i32
    %c0_i32_0 = arith.constant 0 : i32
    %c0_i32_1 = arith.constant 0 : i32
    return %c0_i32, %c0_i32_0 : i32, i32
  }
  func.func @transform_6(%arg0: i32) -> (i32, i32) {
    %c0_i32 = arith.constant 0 : i32
    %c0_i32_0 = arith.constant 0 : i32
    %c0_i32_1 = arith.constant 0 : i32
    return %c0_i32, %c0_i32_0 : i32, i32
  }
  func.func @transform_7(%arg0: i32) -> (i32, i32) {
    %c0_i32 = arith.constant 0 : i32
    %c0_i32_0 = arith.constant 0 : i32
    return %arg0, %c0_i32 : i32, i32
  }
}

</mosaic_0001>

<bundles_post_ra>
// kernel: tpu_custom_call.1
= control target key start
LH: loop header
LB: loop body
LE: loop exit
PB: predicated region body
PF: predicated region fallthrough
CT: control target
= control target key end

     0   :  { %s1495_s24 = smov 0   ;;  %s1497_s25 = smov 0   ;;  %s1772_s0 = inlined_call_operand.vmem [shape: f32[38,232], index: 0, kind: input, shape index: {}]   ;;  %s1773_s1 = inlined_call_operand.vmem [shape: bf16[232,160], index: 1, kind: input, shape index: {}]   ;;  %s1774_s2 = inlined_call_operand.vmem [shape: f32[1,160], index: 2, kind: input, shape index: {}]   ;;  %s1775_s3 = inlined_call_operand.vmem [shape: bf16[160,160], index: 3, kind: input, shape index: {}]   ;;  %s1776_s4 = inlined_call_operand.vmem [shape: f32[1,160], index: 4, kind: input, shape index: {}]   ;;  %s1777_s5 = inlined_call_operand.vmem [shape: bf16[160,16], index: 5, kind: input, shape index: {}]   ;;  %s1778_s6 = inlined_call_operand.vmem [shape: f32[1,16], index: 6, kind: input, shape index: {}]   ;;  %s1779_s7 = inlined_call_operand.vmem [shape: f32[38,16], index: 7, kind: output, shape index: {}]  }
   0x1   :  { %s1499_s26 = smov 0  }
   0x2 LB: > { %s1508_s27 = sadd.s32 4294967295, %s1420_s26   ;;  %s1510_s28 = sadd.s32 1, %s1420_s26   ;;  %s1420_s26 = sphi %s1499_s26, %s1783_s26   ;;  %s1416_s25 = sphi %s1497_s25, %s1782_s25   ;;  %s1412_s24 = sphi %s1495_s24, %s1781_s24  }
   0x3   : > { %s173_s29 = ssub.s32 %s1420_s26, %s1510_s28  ;;  %s176_s30 = sadd.s32 1, %s1416_s25 }
   0x4   : > { %p174_p0 = scmp.eq.s32.totalorder %s173_s29, 0  ;;  %p186_p1 = scmp.ne.s32.totalorder %s1416_s25, %s1412_s24 }
   0x5   : > { %p187_p2 = scmp.eq.s32.totalorder %s1508_s27, 2  ;;  %p1102_p3 = scmp.ge.s32.totalorder %s1420_s26, 1 }
   0x6   : > { %s1518_s8 = scalar_select %p174_p0, %s1416_s25, %s176_s30  }
   0x7   : > { %p1520_p4 = por %p187_p2, %p186_p1  ;;  %p249_p5 = scmp.lt.s32.totalorder %s1420_s26, 4 }
   0x9   : > { %p250_p6 = pnand %p1102_p3, %p249_p5 }
   0xa   : > { %v1282_v0 = vld [vmem:[%s1773_s1 + $0x4] ss:$8 sps:$4 sm:$0xff] (!%p250_p6)   ;;  %v1284_v1 = vld [vmem:[%s1773_s1] ss:$8 sps:$4 sm:$0xff] (!%p250_p6)   ;;  %v1285_v2 = vld [vmem:[%s1773_s1 + $0x14] ss:$8 sps:$4 sm:$0xff] (!%p250_p6)   ;;  %v346_v59 = vlaneseq (!%p250_p6) }
   0xb   : > { %253 = sbr.rel (%p250_p6) target bundleno = 781 (0x30d), region = 48  ;;  %512 = vmatprep.subr.bf16.mxu0 (!%p250_p6), %v1282_v0  ;;  %s1534_s16 = sshll.u32 (!%p250_p6), %s1508_s27, 1  ;;  %v1287_v3 = vld [vmem:[%s1773_s1 + $0x10] ss:$8 sps:$4 sm:$0xff] (!%p250_p6)   ;;  %v1288_v4 = vld [vmem:[%s1773_s1 + $0x24] ss:$8 sps:$4 sm:$0xff] (!%p250_p6)  }
   0xc   : > { %513 = vmatpush1.bf16.msra.mxu0 (!%p250_p6), %v1284_v1  ;;  %p292_p7 = scmp.lt.s32.totalorder (!%p250_p6), %s1534_s16, 4  ;;  %v1290_v5 = vld [vmem:[%s1773_s1 + $0x20] ss:$8 sps:$4 sm:$0xff] (!%p250_p6)   ;;  %v1291_v6 = vld [vmem:[%s1773_s1 + $0x34] ss:$8 sps:$4 sm:$0xff] (!%p250_p6)   ;;  %vm501_vm0 = vcmask (!%p250_p6), 850944  }
   0xd   : > { %514 = vmatprep.subr.bf16.mxu0 (!%p250_p6), %v1285_v2  ;;  %v1293_v7 = vld [vmem:[%s1773_s1 + $0x30] ss:$8 sps:$4 sm:$0xff] (!%p250_p6)   ;;  %v1294_v8 = vld [vmem:[%s1773_s1 + $0x44] ss:$8 sps:$4 sm:$0xff] (!%p250_p6)   ;;  %v1296_v9 = vld [vmem:[%s1773_s1 + $0x40] ss:$8 sps:$4 sm:$0xff] (!%p250_p6)  }
   0xe   : > { %v1297_v10 = vld [vmem:[%s1773_s1 + $0x54] ss:$8 sps:$4 sm:$0xff] (!%p250_p6)   ;;  %v1299_v11 = vld [vmem:[%s1773_s1 + $0x50] ss:$8 sps:$4 sm:$0xff] (!%p250_p6)   ;;  %v1300_v14 = vld [vmem:[%s1773_s1 + $0x64] ss:$8 sps:$4 sm:$0xff] (!%p250_p6)  }
   0xf   : > { %v1326_v16 = vld [vmem:[%s1775_s3 + $0x4] ss:$8 sps:$4 sm:$0xff] (!%p250_p6)   ;;  %v1328_v17 = vld [vmem:[%s1775_s3] ss:$8 sps:$4 sm:$0xff] (!%p250_p6)   ;;  %v1329_v19 = vld [vmem:[%s1775_s3 + $0x14] ss:$8 sps:$4 sm:$0xff] (!%p250_p6)  }
  0x10   : > { %515 = vmatpush1.bf16.msra.mxu0 (!%p250_p6), %v1287_v3  ;;  %v1302_v18 = vld [vmem:[%s1773_s1 + $0x60] ss:$8 sps:$4 sm:$0xff] (!%p250_p6)   ;;  %v1303_v20 = vld [vmem:[%s1773_s1 + $0x74] ss:$8 sps:$4 sm:$0xff] (!%p250_p6)   ;;  %697 = vmatprep.subr.bf16.mxu1 (!%p250_p6), %v1326_v16  ;;  %v1331_v21 = vld [vmem:[%s1775_s3 + $0x10] ss:$8 sps:$4 sm:$0xff] (!%p250_p6)  }
  0x11   : > { %516 = vmatprep.subr.bf16.mxu0 (!%p250_p6), %v1288_v4  ;;  %698 = vmatpush1.bf16.msra.mxu1 (!%p250_p6), %v1328_v17  ;;  %v1332_v22 = vld [vmem:[%s1775_s3 + $0x24] ss:$8 sps:$4 sm:$0xff] (!%p250_p6)   ;;  %v1305_v23 = vld [vmem:[%s1773_s1 + $0x70] ss:$8 sps:$4 sm:$0xff] (!%p250_p6)   ;;  %v1334_v25 = vld [vmem:[%s1775_s3 + $0x20] ss:$8 sps:$4 sm:$0xff] (!%p250_p6)  }
  0x12   : > { %s293_s29 = scalar_select %p292_p7, %s1534_s16, 4  ;;  %699 = vmatprep.subr.bf16.mxu1 %v1329_v19  ;;  %v1306_v24 = vld [vmem:[%s1773_s1 + $0x84] ss:$8 sps:$4 sm:$0xff]   ;;  %v1308_v26 = vld [vmem:[%s1773_s1 + $0x80] ss:$8 sps:$4 sm:$0xff]   ;;  %vm505_vm1 = vcmask 1043456  }
  0x13   : > { %v1335_v27 = vld [vmem:[%s1775_s3 + $0x34] ss:$8 sps:$4 sm:$0xff]   ;;  %v1337_v29 = vld [vmem:[%s1775_s3 + $0x30] ss:$8 sps:$4 sm:$0xff]   ;;  %v1338_v30 = vld [vmem:[%s1775_s3 + $0x44] ss:$8 sps:$4 sm:$0xff]  }
  0x14   : > { %517 = vmatpush1.bf16.msra.mxu0 %v1290_v5  ;;  %s1189_s13 = sshll.u32 %s293_s29, 4  ;;  %v1309_v28 = vld [vmem:[%s1773_s1 + $0x94] ss:$8 sps:$4 sm:$0xff]   ;;  %v1311_v31 = vld [vmem:[%s1773_s1 + $0x90] ss:$8 sps:$4 sm:$0xff]   ;;  %v343_v45 = vld [vmem:[%s1773_s1 + $0xe0] sm:$0xff] }
  0x15   : > { %518 = vmatprep.subr.bf16.mxu0 %v1291_v6  ;;  %s1565_s21 = scalar_lea.vmem %s1772_s0, %s1189_s13  ;;  %700 = vmatpush1.bf16.msra.mxu1 %v1331_v21  ;;  %v1312_v32 = vld [vmem:[%s1773_s1 + $0xa4] ss:$8 sps:$4 sm:$0xff]   ;;  %v1340_v33 = vld [vmem:[%s1775_s3 + $0x40] ss:$8 sps:$4 sm:$0xff]   ;;  %v1341_v34 = vld [vmem:[%s1775_s3 + $0x54] ss:$8 sps:$4 sm:$0xff]   ;;  %v1136_v47 = vcombine.high %v343_v45, %v343_v45  ;;  %v1135_v48 = vcombine.low %v343_v45, %v343_v45 }
  0x16   : > { %v310_v12 = vld [vmem:[%s1565_s21 + $0x8] sm:$0xff]  ;;  %v312_v13 = vld [vmem:[%s1565_s21 + $0x18] sm:$0xff]  ;;  %701 = vmatprep.subr.bf16.mxu1 %v1332_v22  ;;  %v309_v49 = vld [vmem:[%s1565_s21] sm:$0xff]  ;;  %v1454_v58 = vmov 0   ;;  %v347_v60 = vshrl.u32 %v346_v59, 7  ;;  %vm693_vm2 = vcmask 261120  }
  0x17   : > { %v314_v15 = vpack.c.bf16 %v312_v13, %v310_v12  ;;  %v1314_v35 = vld [vmem:[%s1773_s1 + $0xa0] ss:$8 sps:$4 sm:$0xff]   ;;  %v1315_v36 = vld [vmem:[%s1773_s1 + $0xb4] ss:$8 sps:$4 sm:$0xff]   ;;  %v1343_v37 = vld [vmem:[%s1775_s3 + $0x50] ss:$8 sps:$4 sm:$0xff]  }
  0x18   : > { %519 = vmatpush1.bf16.msra.mxu0 %v1293_v7  ;;  %v1344_v38 = vld [vmem:[%s1775_s3 + $0x64] ss:$8 sps:$4 sm:$0xff]   ;;  %v1317_v39 = vld [vmem:[%s1773_s1 + $0xb0] ss:$8 sps:$4 sm:$0xff]   ;;  %v1346_v41 = vld [vmem:[%s1775_s3 + $0x60] ss:$8 sps:$4 sm:$0xff]  }
  0x19   : > { %520 = vmatprep.subr.bf16.mxu0 %v1294_v8  ;;  %1138 = vmatprep.mubr.msk.bf16.mxu0 %vm501_vm0, %v314_v15  ;;  %v1318_v40 = vld [vmem:[%s1773_s1 + $0xc4] ss:$8 sps:$4 sm:$0xff]   ;;  %v1347_v42 = vld [vmem:[%s1775_s3 + $0x74] ss:$8 sps:$4 sm:$0xff]   ;;  %v1320_v43 = vld [vmem:[%s1773_s1 + $0xc0] ss:$8 sps:$4 sm:$0xff]  }
  0x1a   : > { %702 = vmatpush1.bf16.msra.mxu1 %v1334_v25  ;;  %v1321_v44 = vld [vmem:[%s1773_s1 + $0xd4] ss:$8 sps:$4 sm:$0xff]   ;;  %v1323_v46 = vld [vmem:[%s1773_s1 + $0xd0] ss:$8 sps:$4 sm:$0xff]   ;;  %v507_v51 = vsel %vm505_vm1, %v1135_v48, 0  ;;  %v348_v61 = vsub.s32 0, %v347_v60 }
  0x1b   : > { %703 = vmatprep.subr.bf16.mxu1 %v1335_v27  ;;  %v311_v50 = vld [vmem:[%s1565_s21 + $0x10] sm:$0xff]  ;;  %v1350_v54 = vld [vmem:[%s1775_s3 + $0x84] ss:$8 sps:$4 sm:$0xff]   ;;  %v1352_v55 = vld [vmem:[%s1775_s3 + $0x80] ss:$8 sps:$4 sm:$0xff]   ;;  %v352_v63 = vsub.s32 1, %v347_v60 }
  0x1c   : > { %521 = vmatpush1.bf16.msra.mxu0 %v1296_v9  ;;  %v313_v52 = vpack.c.bf16 %v311_v50, %v309_v49  ;;  %v1349_v53 = vld [vmem:[%s1775_s3 + $0x70] ss:$8 sps:$4 sm:$0xff]   ;;  %v1353_v56 = vld [vmem:[%s1775_s3 + $0x94] ss:$8 sps:$4 sm:$0xff]   ;;  %v344_v62 = vld [vmem:[%s1774_s2] sm:$0x3] }
  0x1d   : > { %522 = vmatprep.subr.bf16.mxu0 %v1297_v10  ;;  %v1355_v57 = vld [vmem:[%s1775_s3 + $0x90] ss:$8 sps:$4 sm:$0xff]   ;;  %v349_v0 = vrot.slane %v344_v62, %v348_v61  ;;  %v353_v1 = vrot.slane %v344_v62, %v352_v63  ;;  %v1356_v16 = vld [vmem:[%s1777_s5] sm:$0xff]   ;;  %v1357_v17 = vld [vmem:[%s1777_s5 + $0x8] sm:$0xff]   ;;  %s283_s13 = sand.u32 1, %s1412_s24   ;;  %vm877_vm3 = vcmask 130048  }
  0x1e   : > { %704 = vmatpush1.bf16.msra.mxu1 %v1337_v29  ;;  %v1359_v19 = vld [vmem:[%s1777_s5 + $0x18] sm:$0xff]   ;;  %v1361_v21 = vld [vmem:[%s1777_s5 + $0x28] sm:$0xff]   ;;  %v1362_v22 = vld [vmem:[%s1777_s5 + $0x30] sm:$0xff]   ;;  %s1103_s14 = sshll.u32 %s283_s13, 4  ;;  %s888_s24 = ssub.s32 (%p1520_p4), 5, %s1534_s16 }
  0x1f   : > { %705 = vmatprep.subr.bf16.mxu1 %v1338_v30  ;;  %v1365_v25 = vld [vmem:[%s1777_s5 + $0x48] sm:$0xff]   ;;  %s1727_s21 = scalar_lea.vmem [#allocation2], %s1103_s14   ;;  %s1190_s18 = sshll.u32 (%p1520_p4), %s1508_s27, 4 }
  0x20   : > { %523 = vmatpush1.bf16.msra.mxu0 %v1299_v11  ;;  %p889_p8 = scmp.lt.s32.totalorder (%p1520_p4), %s888_s24, 2  ;;  %s1738_s22 = scalar_lea.vmem (%p1520_p4), %s1779_s7, %s1190_s18  }
  0x21   : > { %524 = vmatprep.subr.bf16.mxu0 %v1300_v14 }
  0x22   : > { %706 = vmatpush1.bf16.msra.mxu1 %v1340_v33 }
  0x23   : > { %707 = vmatprep.subr.bf16.mxu1 %v1341_v34 }
  0x24   : > { %525 = vmatpush1.bf16.msra.mxu0 %v1302_v18  ;;  %v1358_v18 = vld [vmem:[%s1777_s5 + $0x10] sm:$0xff]  }
  0x25   : > { %526 = vmatprep.subr.bf16.mxu0 %v1303_v20  ;;  %v1360_v20 = vld [vmem:[%s1777_s5 + $0x20] sm:$0xff]  }
  0x26   : > { %708 = vmatpush1.bf16.msra.mxu1 %v1343_v37 }
  0x27   : > { %709 = vmatprep.subr.bf16.mxu1 %v1344_v38 }
  0x28   : > { %527 = vmatpush1.bf16.msra.mxu0 %v1305_v23  ;;  %v1363_v23 = vld [vmem:[%s1777_s5 + $0x38] sm:$0xff]  }
  0x29   : > { %528 = vmatprep.subr.bf16.mxu0 %v1306_v24  ;;  %v1364_v24 = vld [vmem:[%s1777_s5 + $0x40] sm:$0xff]  }
  0x2a   : > { %710 = vmatpush1.bf16.msra.mxu1 %v1346_v41 }
  0x2b   : > { %711 = vmatprep.subr.bf16.mxu1 %v1347_v42 }
  0x2c   : > { %529 = vmatpush1.bf16.msra.mxu0 %v1308_v26  ;;  %v581_v26 = vld [vmem:[%s1776_s4] sm:$0x3] }
  0x2d   : > { %530 = vmatprep.subr.bf16.mxu0 %v1309_v28  ;;  %v586_v27 = vrot.slane %v581_v26, %v348_v61  ;;  %v590_v28 = vrot.slane %v581_v26, %v352_v63 }
  0x2e   : > { %712 = vmatpush1.bf16.msra.mxu1 %v1349_v53 }
  0x2f   : > { %713 = vmatprep.subr.bf16.mxu1 %v1350_v54 }
  0x30   : > { %531 = vmatpush1.bf16.msra.mxu0 %v1311_v31 }
  0x31   : > { %532 = vmatprep.subr.bf16.mxu0 %v1312_v32 }
  0x32   : > { %714 = vmatpush1.bf16.msra.mxu1 %v1352_v55 }
  0x33   : > { %715 = vmatprep.subr.bf16.mxu1 %v1353_v56 }
  0x34   : > { %533 = vmatpush1.bf16.msra.mxu0 %v1314_v35 }
  0x35   : > { %534 = vmatprep.subr.bf16.mxu0 %v1315_v36 }
  0x36   : > { %716 = vmatpush1.bf16.msra.mxu1 %v1355_v57 }
  0x37   : > { %836 = vmatprep.subr.bf16.mxu1 %v1454_v58 }
  0x38   : > { %535 = vmatpush1.bf16.msra.mxu0 %v1317_v39 }
  0x39   : > { %536 = vmatprep.subr.bf16.mxu0 %v1318_v40 }
  0x3c   : > { %537 = vmatpush1.bf16.msra.mxu0 %v1320_v43  ;;  %v1160_v43 = vld [vmem:[%s1778_s6] ss:$0 sm:$0xff] }
  0x3d   : > { %538 = vmatprep.subr.bf16.mxu0 %v1321_v44 }
  0x40   : > { %539 = vmatpush1.bf16.msra.mxu0 %v1323_v46 }
  0x41   : > { %1137 = vmatprep.subr.msk.bf16.mxu0 %vm505_vm1, %v1136_v47 }
  0x44   : > { %541 = vmatpush1.bf16.msra.mxu0 %v507_v51 }
  0x47   : > { %545 = vmatmul.mubr.bf16.vlgmr.msra.gmra.mrb[0].mxu0 %v313_v52 }
 0x11a   : > { %v546_v2 = vpop.f32.mrb[0].mxu0 }
 0x11b   : > { %v547_v3 = vadd.f32 %v546_v2, %v349_v0  ;;  %v548_v4 = vpop.f32.mrb[1].mxu0 }
 0x11c   : > { %v549_v5 = vadd.f32 %v548_v4, %v353_v1  ;;  %v550_v6 = vpop.f32.mrb[2].mxu0 }
 0x11d   : > { %v551_v7 = vadd.f32 %v550_v6, %v349_v0  ;;  %v552_v8 = vpop.f32.mrb[3].mxu0  ;;  %v555_v10 = vmax.f32 %v547_v3, 0.0 }
 0x11e   : > { %v553_v9 = vadd.f32 %v552_v8, %v353_v1  ;;  %v556_v12 = vmax.f32 %v549_v5, 0.0 }
 0x11f   : > { %v557_v11 = vmax.f32 %v551_v7, 0.0 }
 0x120   : > { %v558_v13 = vmax.f32 %v553_v9, 0.0 }
 0x121   : > { %v559_v14 = vpack.c.bf16 %v557_v11, %v555_v10 }
 0x122   : > { %v560_v15 = vpack.c.bf16 %v558_v13, %v556_v12 }
 0x124   : > { %1159 = vmatprep.mubr.msk.bf16.mxu1 %vm693_vm2, %v560_v15 }
 0x125   : > { %730 = vmatmul.mubr.bf16.vlgmr.msra.gmra.mrb[0].mxu1 %v559_v14 }
 0x126   : > { %837 = vmatpush1.bf16.msra.mxu1 %v1356_v16 }
 0x127   : > { %838 = vmatprep.subr.bf16.mxu1 %v1454_v58 }
 0x12a   : > { %839 = vmatpush1.bf16.msra.mxu1 %v1357_v17 }
 0x12b   : > { %840 = vmatprep.subr.bf16.mxu1 %v1454_v58 }
 0x12e   : > { %841 = vmatpush1.bf16.msra.mxu1 %v1358_v18 }
 0x12f   : > { %842 = vmatprep.subr.bf16.mxu1 %v1454_v58 }
 0x132   : > { %843 = vmatpush1.bf16.msra.mxu1 %v1359_v19 }
 0x133   : > { %844 = vmatprep.subr.bf16.mxu1 %v1454_v58 }
 0x136   : > { %845 = vmatpush1.bf16.msra.mxu1 %v1360_v20 }
 0x137   : > { %846 = vmatprep.subr.bf16.mxu1 %v1454_v58 }
 0x13a   : > { %847 = vmatpush1.bf16.msra.mxu1 %v1361_v21 }
 0x13b   : > { %848 = vmatprep.subr.bf16.mxu1 %v1454_v58 }
 0x13e   : > { %849 = vmatpush1.bf16.msra.mxu1 %v1362_v22 }
 0x13f   : > { %850 = vmatprep.subr.bf16.mxu1 %v1454_v58 }
 0x142   : > { %851 = vmatpush1.bf16.msra.mxu1 %v1363_v23 }
 0x143   : > { %852 = vmatprep.subr.bf16.mxu1 %v1454_v58 }
 0x146   : > { %853 = vmatpush1.bf16.msra.mxu1 %v1364_v24 }
 0x147   : > { %854 = vmatprep.subr.bf16.mxu1 %v1454_v58 }
 0x14a   : > { %855 = vmatpush1.bf16.msra.mxu1 %v1365_v25 }
 0x1f8   : > { %v731_v29 = vpop.f32.mrb[0].mxu1 }
 0x1f9   : > { %v732_v30 = vadd.f32 %v731_v29, %v586_v27  ;;  %v733_v31 = vpop.f32.mrb[1].mxu1 }
 0x1fa   : > { %v734_v32 = vadd.f32 %v733_v31, %v590_v28  ;;  %v735_v33 = vpop.f32.mrb[2].mxu1 }
 0x1fb   : > { %v736_v34 = vadd.f32 %v735_v33, %v586_v27  ;;  %v737_v35 = vpop.f32.mrb[3].mxu1  ;;  %v740_v37 = vmax.f32 %v732_v30, 0.0 }
 0x1fc   : > { %v738_v36 = vadd.f32 %v737_v35, %v590_v28  ;;  %v741_v39 = vmax.f32 %v734_v32, 0.0 }
 0x1fd   : > { %v742_v38 = vmax.f32 %v736_v34, 0.0 }
 0x1fe   : > { %v743_v40 = vmax.f32 %v738_v36, 0.0 }
 0x1ff   : > { %v744_v41 = vpack.c.bf16 %v742_v38, %v740_v37 }
 0x200   : > { %v745_v42 = vpack.c.bf16 %v743_v40, %v741_v39 }
 0x202   : > { %1171 = vmatprep.mubr.msk.bf16.mxu1 %vm693_vm2, %v745_v42 }
 0x203   : > { %869 = vmatmul.mubr.bf16.vlgmr.msra.gmra.mrb[4].mxu1 %v744_v41 }
 0x2d5   : > { %886 = sbr.rel (!%p1520_p4) target bundleno = 781 (0x30d), region = 52 }
 0x2d6   : > { %v870_v44 = vpop.f32.mrb[4].mxu1 }
 0x2d7   : > { %v871_v45 = vadd.f32 %v1160_v43, %v870_v44  ;;  %v872_v46 = vpop.f32.mrb[5].mxu1 }
 0x2d8   : > { %v873_v47 = vpop.f32.mrb[6].mxu1 }
 0x2d9   : > { %878 = vst.msk [vmem:[%s1727_s21] sm:$0xff] %vm877_vm3, %v871_v45  ;;  %v874_v48 = vadd.f32 %v1160_v43, %v873_v47  ;;  %v875_v49 = vpop.f32.mrb[7].mxu1 }
 0x2db   : > { %879 = vst.msk [vmem:[%s1727_s21 + $0x8] sm:$0xff] %vm877_vm3, %v874_v48 }
 0x2dc   : > { %s1785_s24 = smov (!%p889_p8, %s888_s24), 2 }
 0x2dd   : > { %s1174_s23 = sshll.u32 %s1785_s24, 7 }
 0x2de   : > { %p1177_p9 = scmp.eq.s32.totalorder %s1174_s23, 0 }
 0x2df   : > { %s1744_s26 = sshrl.u32 (!%p1177_p9), %s1785_s24, 1 }
 0x2e0   : > { %897 = sbr.rel (%p1177_p9) target bundleno = 781 (0x30d), region = 56  ;;  %p1178_p10 = scmp.le.s32.totalorder (!%p1177_p9), %s1744_s26, 0 }
 0x2e7   : > { %1055 = sbr.rel (%p1178_p10) target bundleno = 760 (0x2f8), region = 132  ;;  %s1422_s27 = smov (!%p1178_p10), %s1738_s22  }
 0x2e8   : > { %s1426_s9 = smov (!%p1178_p10), %s1727_s21   ;;  %s1430_s16 = smov (!%p1178_p10), 0  }
 0x2e9   : > { %s1434_s29 = smov (!%p1178_p10), 0  }
 0x2ee LB: >> { %v961_v50 = vld [vmem:[%s1428_s9] sm:$0xff]  ;;  %v963_v51 = vld [vmem:[%s1428_s9 + $0x8] sm:$0xff]  ;;  %s965_s30 = sadd.s32 1, %s1432_s16  ;;  %s955_s29 = sadd.s32 1, %s1436_s29   ;;  %s1436_s29 = sphi %s1434_s29, %s955_s29   ;;  %s1432_s16 = sphi %s1430_s16, %s1431_s16   ;;  %s1428_s9 = sphi %s1426_s9, %s970_s9   ;;  %s1424_s27 = sphi %s1422_s27, %s971_s27  }
 0x2ef   : >> { %962 = vst [vmem:[%s1424_s27] sm:$0xff] %v961_v50  ;;  %964 = vst [vmem:[%s1424_s27 + $0x8] sm:$0xff] %v963_v51  ;;  %p966_p11 = scmp.ge.s32.totalorder %s965_s30, %s1744_s26  ;;  %p954_p12 = scmp.ge.s32.totalorder %s955_s29, %s1744_s26 }
 0x2f1   : >> { %s1787_s30 = smov (%p966_p11, %s965_s30), 0  ;;  %957 = sbr.rel (!%p954_p12) target bundleno = 750 (0x2ee), region = 138 }
 0x2f2   : >> { %s1179_s10 = sshll.u32 %s1787_s30, 4  ;;  %s1431_s16 = smov %s1787_s30  }
 0x2f3   : >> { %s970_s9 = scalar_lea.vmem %s1727_s21, %s1179_s10 [#allocation2]   ;;  %s971_s27 = scalar_lea.vmem %s1738_s22, %s1179_s10  }
 0x2f8 PF: > { %s1754_s11 = sand.u32 1, %s1785_s24   ;;  %s1191_s12 = sshll.u32 %s1744_s26, 4 }
 0x2f9   : > { %s976_s13 = scalar_lea.vmem %s1727_s21, %s1191_s12 [#allocation2]   ;;  %s978_s14 = scalar_lea.vmem %s1738_s22, %s1191_s12  }
 0x2fa   : > { %p1184_p13 = scmp.le.s32.totalorder %s1754_s11, 0 }
 0x2fb   : > { %s1438_s15 = smov (!%p1184_p13), %s978_s14   ;;  %s1442_s17 = smov (!%p1184_p13), %s976_s13  }
 0x2fc   : > { %1069 = sbr.rel (%p1184_p13) target bundleno = 781 (0x30d), region = 143  ;;  %s1446_s18 = smov (!%p1184_p13), 0  }
 0x2fd   : > { %s1450_s19 = smov (!%p1184_p13), 0  }
 0x303 LB: >> { %v988_v52 = vld [vmem:[%s1444_s17] sm:$0xff]  ;;  %s990_s24 = sadd.s32 1, %s1448_s18  ;;  %s982_s19 = sadd.s32 1, %s1452_s19   ;;  %s1452_s19 = sphi %s1450_s19, %s982_s19   ;;  %s1448_s18 = sphi %s1446_s18, %s1447_s18   ;;  %s1444_s17 = sphi %s1442_s17, %s995_s17   ;;  %s1440_s15 = sphi %s1438_s15, %s996_s15  }
 0x304   : >> { %989 = vst [vmem:[%s1440_s15] sm:$0xff] %v988_v52  ;;  %p991_p0 = scmp.ge.s32.totalorder %s990_s24, %s1754_s11  ;;  %p981_p1 = scmp.ge.s32.totalorder %s982_s19, %s1754_s11 }
 0x306   : >> { %s1789_s24 = smov (%p991_p0, %s990_s24), 0  ;;  %984 = sbr.rel (!%p981_p1) target bundleno = 771 (0x303), region = 149 }
 0x307   : >> { %s1185_s21 = sshll.u32 %s1789_s24, 3  ;;  %s1447_s18 = smov %s1789_s24  }
 0x308   : >> { %s995_s17 = scalar_lea.vmem %s976_s13, %s1185_s21 [#allocation2]   ;;  %s996_s15 = scalar_lea.vmem %s978_s14, %s1185_s21  }
 0x30d PF: > { %p14_p2 = scmp.ge.s32.totalorder %s1510_s28, 5   ;;  %s1781_s24 = smov %s1416_s25 }
 0x30e   : > { %s1782_s25 = smov %s1518_s8  ;;  %s1783_s26 = smov %s1510_s28 }
 0x30f   :  { %16 = sbr.rel (!%p14_p2) target bundleno = 2 (0x2), region = 160 }

</bundles_post_ra>
